<compile_context>
chip_gen: v7x
topology: tpu7x:2x2x1
jax: 0.10.0
libtpu: 0.0.40
codegen_flags: <defaults>
</compile_context>

<pallas_src>
import jax
import jax.numpy as jnp
from jax.experimental import pallas as pl
from jax.experimental.pallas import tpu as pltpu


def _make_fm_kernel(num_fields, embed_dim, reduce_sum):
    F, D = num_fields, embed_dim

    def kernel(x_ref, o_ref):
        # x_ref: (tb, F*D) lane-dense block in VMEM.
        # Field reduction via a short unrolled loop of static lane slices.
        x0 = x_ref[:, 0:D].astype(jnp.float32)
        s = x0
        sq = x0 * x0
        for f in range(1, F):
            xf = x_ref[:, f * D:(f + 1) * D].astype(jnp.float32)
            s = s + xf
            sq = sq + xf * xf
        ix = s * s - sq                                   # (tb, D)
        if reduce_sum:
            out = 0.5 * jnp.sum(ix, axis=1, keepdims=True)  # (tb, 1)
        else:
            out = 0.5 * ix                                  # (tb, D)
        o_ref[...] = out.astype(o_ref.dtype)

    return kernel


def _pick_batch_tile(B, FD, itemsize):
    """Pick a batch tile: ~4 MiB per input block, multiple of 8, capped at 1024."""
    budget_bytes = 4 * 1024 * 1024
    tb = budget_bytes // max(1, FD * itemsize)
    tb = max(8, min(int(tb), 1024))
    tb = (tb // 8) * 8
    if tb >= B:
        # Single block equal to the full batch extent (satisfies the tiling
        # rule because the block dim equals the full array dim).
        return B
    return tb


def factorization_machine(x, reduce_sum=True):
    """x: (batch, num_fields, embed_dim) -> (batch, 1) if reduce_sum else (batch, embed_dim)."""
    B, F, D = x.shape
    FD = F * D

    # Lane-dense layout: contiguous row-major reshape (free at the XLA level).
    x2 = x.reshape(B, FD)

    tb = _pick_batch_tile(B, FD, x.dtype.itemsize)
    grid = (pl.cdiv(B, tb),)

    in_spec = pl.BlockSpec((tb, FD), lambda i: (i, 0))

    if reduce_sum:
        out_shape = jax.ShapeDtypeStruct((B, 1), x.dtype)
        out_spec = pl.BlockSpec((tb, 1), lambda i: (i, 0))
    else:
        # TODO(synk): for D < 128 this output is a masked (vst.msk) store;
        # packing multiple rows per 128-lane slab would make it lane-dense,
        # but output traffic is ~1/F of input traffic so it is secondary.
        out_shape = jax.ShapeDtypeStruct((B, D), x.dtype)
        out_spec = pl.BlockSpec((tb, D), lambda i: (i, 0))

    kernel = _make_fm_kernel(F, D, reduce_sum)

    return pl.pallas_call(
        kernel,
        out_shape=out_shape,
        grid_spec=pltpu.PrefetchScalarGridSpec(
            num_scalar_prefetch=0,
            grid=grid,
            in_specs=[in_spec],
            out_specs=out_spec,
        ),
        compiler_params=pltpu.CompilerParams(
            dimension_semantics=("parallel",),
            vmem_limit_bytes=32 << 20,
        ),
    )(x2)


def _reference(x, reduce_sum=True):
    x32 = x.astype(jnp.float32)
    square_of_sum = jnp.sum(x32, axis=1) ** 2
    sum_of_square = jnp.sum(x32 ** 2, axis=1)
    ix = square_of_sum - sum_of_square
    if reduce_sum:
        ix = jnp.sum(ix, axis=1, keepdims=True)
    return (0.5 * ix).astype(x.dtype)


if __name__ == "__main__":
    key = jax.random.PRNGKey(0)

    # --- Small primary test (single-block path) ---
    batch, num_fields, embed_dim = 2, 4, 32
    x = jax.random.normal(key, (batch, num_fields, embed_dim), dtype=jnp.float32)

    out = factorization_machine(x, reduce_sum=True)
    out = jax.block_until_ready(out)
    ref = _reference(x, reduce_sum=True)
    assert out.shape == (batch, 1), out.shape
    assert jnp.allclose(out, ref, atol=1e-5, rtol=1e-5)

    out2 = factorization_machine(x, reduce_sum=False)
    out2 = jax.block_until_ready(out2)
    ref2 = _reference(x, reduce_sum=False)
    assert out2.shape == (batch, embed_dim), out2.shape
    assert jnp.allclose(out2, ref2, atol=1e-5, rtol=1e-5)

    # --- Tiled-path test (batch not a multiple of the tile, exercises padding) ---
    key2 = jax.random.PRNGKey(1)
    B2, F2, D2 = 1040, 8, 16
    xl = jax.random.normal(key2, (B2, F2, D2), dtype=jnp.float32)

    outl = factorization_machine(xl, reduce_sum=True)
    outl = jax.block_until_ready(outl)
    refl = _reference(xl, reduce_sum=True)
    assert outl.shape == (B2, 1), outl.shape
    assert jnp.allclose(outl, refl, atol=1e-4, rtol=1e-4)

    outl2 = factorization_machine(xl, reduce_sum=False)
    outl2 = jax.block_until_ready(outl2)
    refl2 = _reference(xl, reduce_sum=False)
    assert outl2.shape == (B2, D2), outl2.shape
    assert jnp.allclose(outl2, refl2, atol=1e-4, rtol=1e-4)

    print("KERNEL_OK")
</pallas_src>

<mosaic_0001>
module attributes {stable_mosaic.version = 11 : i64} {
  func.func @kernel(%arg0: i32, %arg1: memref<2x128xf32, #tpu.memory_space<vmem>>, %arg2: memref<2x1xf32, #tpu.memory_space<vmem>>) attributes {dimension_semantics = [#tpu.dimension_semantics<parallel>], iteration_bounds = array<i64: 1>, scalar_prefetch = 0 : i64, scratch_operands = 0 : i64, tpu.core_type = #tpu.core_type<tc>, window_params = [{transform_indices = @transform_0, window_bounds = array<i64: 2, 128>}, {transform_indices = @transform_1, window_bounds = array<i64: 2, 1>}]} {
    %c0 = arith.constant 0 : index
    %c0_0 = arith.constant 0 : index
    %0 = vector.load %arg1[%c0, %c0_0] : memref<2x128xf32, #tpu.memory_space<vmem>>, vector<2x32xf32>
    %1 = arith.mulf %0, %0 : vector<2x32xf32>
    %c0_1 = arith.constant 0 : index
    %c32 = arith.constant 32 : index
    %2 = vector.load %arg1[%c0_1, %c32] : memref<2x128xf32, #tpu.memory_space<vmem>>, vector<2x32xf32>
    %3 = arith.addf %0, %2 : vector<2x32xf32>
    %4 = arith.mulf %2, %2 : vector<2x32xf32>
    %5 = arith.addf %1, %4 : vector<2x32xf32>
    %c0_2 = arith.constant 0 : index
    %c64 = arith.constant 64 : index
    %6 = vector.load %arg1[%c0_2, %c64] : memref<2x128xf32, #tpu.memory_space<vmem>>, vector<2x32xf32>
    %7 = arith.addf %3, %6 : vector<2x32xf32>
    %8 = arith.mulf %6, %6 : vector<2x32xf32>
    %9 = arith.addf %5, %8 : vector<2x32xf32>
    %c0_3 = arith.constant 0 : index
    %c96 = arith.constant 96 : index
    %10 = vector.load %arg1[%c0_3, %c96] : memref<2x128xf32, #tpu.memory_space<vmem>>, vector<2x32xf32>
    %11 = arith.addf %7, %10 : vector<2x32xf32>
    %12 = arith.mulf %10, %10 : vector<2x32xf32>
    %13 = arith.addf %9, %12 : vector<2x32xf32>
    %14 = arith.mulf %11, %11 : vector<2x32xf32>
    %15 = arith.subf %14, %13 : vector<2x32xf32>
    %cst = arith.constant dense<0.000000e+00> : vector<2xf32>
    %16 = vector.multi_reduction <add>, %15, %cst [1] : vector<2x32xf32> to vector<2xf32>
    %17 = vector.shape_cast %16 : vector<2xf32> to vector<2x1xf32>
    %cst_4 = arith.constant 5.000000e-01 : f32
    %18 = vector.broadcast %cst_4 : f32 to vector<2x1xf32>
    %19 = arith.mulf %18, %17 : vector<2x1xf32>
    %c0_5 = arith.constant 0 : index
    %c0_6 = arith.constant 0 : index
    %20 = vector.load %arg2[%c0_5, %c0_6] : memref<2x1xf32, #tpu.memory_space<vmem>>, vector<2x1xf32>
    tpu.vector_store %arg2[%c0_5, %c0_6], %19 {strides = array<i32>} : memref<2x1xf32, #tpu.memory_space<vmem>>, vector<2x1xf32>,
    return
  }
  func.func @transform_0(%arg0: i32) -> (i32, i32) {
    %c0_i32 = arith.constant 0 : i32
    %c0_i32_0 = arith.constant 0 : i32
    return %arg0, %c0_i32 : i32, i32
  }
  func.func @transform_1(%arg0: i32) -> (i32, i32) {
    %c0_i32 = arith.constant 0 : i32
    %c0_i32_0 = arith.constant 0 : i32
    return %arg0, %c0_i32 : i32, i32
  }
}

</mosaic_0001>

<bundles_post_ra>
// kernel: tpu_custom_call.1
= control target key start
LH: loop header
LB: loop body
LE: loop exit
PB: predicated region body
PF: predicated region fallthrough
CT: control target
= control target key end

     0   :  { %6 = vsyncpa [#allocation3], 0  ;;  %s90_s6 = smov [#allocation2]   ;;  %s119_s0 = inlined_call_operand.hbm [shape: f32[2,128], index: 0, kind: input, shape index: {}]   ;;  %s120_s1 = inlined_call_operand.vmem [shape: f32[2,1], index: 1, kind: output, shape index: {}]  }
   0x1   :  { %s13_s7 = sshll.u32 %s90_s6, 4  ;;  %s66_s10 = scalar_lea.hbm %s119_s0, 32  ;;  %s14_s7 = int_to_ptr.vmem [resolvable:$true] %s13_s7 }
   0x2   :  { %p67_p0 = scmp.ne.s32.totalorder %s119_s0, %s66_s10  ;;  %p70_p1 = scmp.lt.u32.totalorder %s66_s10, %s119_s0 }
   0x4   :  { %p72_p2 = pnand %p70_p1, %p67_p0 }
   0x6   :  { %75 = shalt.err (!%p72_p2)
}
   0x7   :  { %s76_s15 = scalar_lea.vmem %s14_s7, 32  ;;  %p81_p4 = scmp.lt.s32.totalorder %s14_s7, %s14_s7 }
   0x8   :  { %p77_p3 = scmp.ne.s32.totalorder %s14_s7, %s76_s15  ;;  %p82_p5 = scmp.lt.s32.totalorder %s76_s15, %s76_s15 }
   0xa   :  { %p83_p6 = por %p82_p5, %p81_p4 }
   0xc   :  { %p84_p7 = pnand %p83_p6, %p77_p3 }
   0xe   :  { %87 = shalt.err (!%p84_p7)
}
   0xf   :  { %16 = dma.hbm_to_vmem [thread:$0]  %s119_s0, 32, %s14_s7, [#allocation3]  }
  0x10   :  { %88 = dma.done.wait [#allocation3], 32  }
  0x11   :  { %89 = vsyncadd [#allocation3], 4294967264  ;;  %v20_v0 = vld [vmem:[#allocation2] sm:$0x3]  ;;  %s91_s18 = smov 64   ;;  %s92_s19 = smov 96  }
  0x12   :  { %32 = vrot.lane.b32.xlu1 %v20_v0, %s91_s18  ;;  %23 = vrot.lane.b32.xlu0 %v20_v0, %s92_s19  ;;  %v21_v1 = vmul.f32 %v20_v0, %v20_v0  ;;  %s93_s20 = smov 32   ;;  %vm50_vm0 = vcmask 254976   ;;  %vm55_vm1 = vcmask 1024  }
  0x16   :  { %36 = vrot.lane.b32.xlu1 %v21_v1, %s91_s18  ;;  %28 = vrot.lane.b32.xlu0 %v21_v1, %s92_s19 }
  0x1a   :  { %44 = vrot.lane.b32.xlu1 %v21_v1, %s93_s20  ;;  %40 = vrot.lane.b32.xlu0 %v20_v0, %s93_s20 }
  0x84   :  { %v33_v2 = vpop.permute.xlu1 %32  ;;  %v24_v3 = vpop.permute.xlu0 %23 }
  0x85   :  { %v26_v4 = vadd.f32 %v24_v3, %v20_v0 }
  0x87   :  { %v35_v9 = vadd.f32 %v33_v2, %v26_v4 }
  0x88   :  { %v37_v5 = vpop.permute.xlu1 %36  ;;  %v29_v6 = vpop.permute.xlu0 %28 }
  0x89   :  { %v31_v7 = vadd.f32 %v29_v6, %v21_v1 }
  0x8b   :  { %v39_v8 = vadd.f32 %v37_v5, %v31_v7 }
  0x8c   :  { %v45_v10 = vpop.permute.xlu1 %44  ;;  %v41_v11 = vpop.permute.xlu0 %40 }
  0x8d   :  { %v43_v12 = vadd.f32 %v41_v11, %v35_v9  ;;  %v47_v13 = vadd.f32 %v45_v10, %v39_v8 }
  0x8f   :  { %v48_v14 = vmul.f32 %v43_v12, %v43_v12 }
  0x91   :  { %v49_v15 = vsub.f32 %v48_v14, %v47_v13 }
  0x93   :  { %v51_v16 = vsel %vm50_vm0, %v49_v15, 0.0 }
  0x94   :  { %52 = vadd.xlane.f32.xlu0 %v51_v16 }
 0x121   :  { %v53_v17 = vpop.xlane.xlu0 %52 }
 0x122   :  { %v54_v18 = vmul.f32 0.5, %v53_v17 }
 0x124   :  { %56 = vst.msk [vmem:[%s120_s1] sm:$0x3] %vm55_vm1, %v54_v18 }
 0x125   :  { %61 = vsyncpa [#allocation3], 1 }

</bundles_post_ra>
